<compile_context>
chip_gen: v7x
topology: tpu7x:2x2x1
jax: 0.10.0
libtpu: 0.0.40
codegen_flags: <defaults>
</compile_context>

<pallas_src>
import functools

import jax
import jax.numpy as jnp
from jax.experimental import pallas as pl
from jax.experimental.pallas import tpu as pltpu

_NEG = -1e30  # sentinel for masked rows (applied after the f32 cast, so bf16-safe)


def _round_up(x, m):
    return (x + m - 1) // m * m


def _combined_loss_kernel(labels_ref, s_ref, t_ref, out_ref, *,
                          batch, num_classes, tile_b, inv_temp):
    pid = pl.program_id(0)
    TB = tile_b

    # Row-validity mask for the ragged last batch tile. Applied with jnp.where
    # BEFORE any max/exp so garbage (possibly Inf/NaN) in the out-of-bounds block
    # region can never reach the reductions.
    row_idx = jax.lax.broadcasted_iota(jnp.int32, (TB, 1), 0) + pid * tile_b
    row_ok = row_idx < batch                                          # [TB,1] bool
    row_mask = row_ok.astype(jnp.float32)                             # [TB,1]

    s = jnp.where(row_ok, s_ref[...].astype(jnp.float32), _NEG)       # [TB,C]
    t = jnp.where(row_ok, t_ref[...].astype(jnp.float32), _NEG)       # [TB,C]
    lbl = labels_ref[...]                                             # [TB,1] int32

    # ---- cross-entropy(student_logits, labels): per-row lse - picked ----
    s_max = jnp.max(s, axis=-1, keepdims=True)
    d = s - s_max                                                     # reused below
    s_sumexp = jnp.sum(jnp.exp(d), axis=-1, keepdims=True)
    cls_idx = jax.lax.broadcasted_iota(jnp.int32, (TB, num_classes), 1)
    picked = jnp.sum(jnp.where(cls_idx == lbl, s, 0.0), axis=-1, keepdims=True)
    ce_row = (s_max + jnp.log(s_sumexp) - picked) * row_mask          # [TB,1]

    # ---- KL(softmax(t/T) || softmax(s/T)) per row ----
    # Reuse the CE max:  s/T - max(s/T) == inv_temp * (s - max(s))  (inv_temp > 0).
    f = inv_temp * d                                                  # [TB,C]
    sT_sumexp = jnp.sum(jnp.exp(f), axis=-1, keepdims=True)           # [TB,1]

    tT = t * inv_temp
    tT_max = jnp.max(tT, axis=-1, keepdims=True)
    e = tT - tT_max                                                   # [TB,C]
    tT_exp = jnp.exp(e)
    tT_sum = jnp.sum(tT_exp, axis=-1, keepdims=True)                  # [TB,1]

    # sum_c softmax(t/T) * (log_softmax(t/T) - log_softmax(s/T))
    #   = sum_c tT_exp*(e - f) / tT_sum + log(sT_sumexp) - log(tT_sum)
    kl_core = jnp.sum(tT_exp * (e - f), axis=-1, keepdims=True)       # [TB,1]
    kl_row = (kl_core / tT_sum + jnp.log(sT_sumexp) - jnp.log(tT_sum)) * row_mask

    ce_sum = jnp.sum(ce_row)
    kl_sum = jnp.sum(kl_row)

    # lane-dense (1, 8, 128) partial-sum block; lane 0 = CE-sum, lane 1 = KL-sum.
    lane = jax.lax.broadcasted_iota(jnp.int32, (1, 8, 128), 2)
    sub_i = jax.lax.broadcasted_iota(jnp.int32, (1, 8, 128), 1)
    out_ref[...] = jnp.where((sub_i == 0) & (lane == 0), ce_sum,
                             jnp.where((sub_i == 0) & (lane == 1), kl_sum,
                                       jnp.float32(0.0)))


def combined_label_loss(labels, student_logits, teacher_logits,
                        student_hidden=None, teacher_hidden=None,
                        *, alpha=0.5, temperature=2.0):
    """JAX/Pallas equivalent of CombinedLabelLoss.forward.

    labels:          int  [B]
    student_logits:  float [B, C] (f32 or bf16)
    teacher_logits:  float [B, C] (f32 or bf16)
    student_hidden / teacher_hidden: unused by the PyTorch forward (signature parity).
    Returns: scalar float32 loss.
    """
    assert 0.0 <= alpha <= 1.0, "Alpha must be between 0 and 1"
    B, C = student_logits.shape
    itemsize = jnp.dtype(student_logits.dtype).itemsize

    # dtype-aware sublane packing: f32 -> 8 rows/vreg, bf16 -> 16, int8/fp8 -> 32.
    sublane_pack = max(8, 32 // max(itemsize, 1))

    # Generation-keyed VMEM budget / tile size.
    try:
        vmem_cap = int(pltpu.get_tpu_info().vmem_capacity_bytes)
    except Exception:
        vmem_cap = 64 * 1024 * 1024  # conservative fallback (v7x-sized)
    if vmem_cap >= 100 * 1024 * 1024:          # v5e / v6e: 128 MiB physical VMEM
        vmem_limit = 96 * 1024 * 1024
        max_block_bytes = 6 * 1024 * 1024      # per-input block (amortize grid-step overhead)
    else:                                      # v7x: 64 MiB physical per TensorCore
        vmem_limit = 40 * 1024 * 1024
        max_block_bytes = 2 * 1024 * 1024

    row_bytes = max(C * itemsize, 1)
    tb = max(sublane_pack, (max_block_bytes // row_bytes) // sublane_pack * sublane_pack)
    tb = min(tb, 2048, _round_up(B, sublane_pack))
    num_tiles = (B + tb - 1) // tb

    labels2 = labels.astype(jnp.int32).reshape(B, 1)

    kernel = functools.partial(_combined_loss_kernel, batch=B, num_classes=C,
                               tile_b=tb, inv_temp=float(1.0 / temperature))

    cost = pl.CostEstimate(
        flops=int(10 * B * C),
        transcendentals=int(3 * B * C),
        bytes_accessed=int(2 * B * C * itemsize + B * 4 + num_tiles * 8 * 128 * 4),
    )

    partial = pl.pallas_call(
        kernel,
        out_shape=jax.ShapeDtypeStruct((num_tiles, 8, 128), jnp.float32),
        grid=(num_tiles,),
        in_specs=[
            pl.BlockSpec((tb, 1), lambda i: (i, 0)),
            pl.BlockSpec((tb, C), lambda i: (i, 0)),   # full class extent in one block
            pl.BlockSpec((tb, C), lambda i: (i, 0)),
        ],
        out_specs=pl.BlockSpec((1, 8, 128), lambda i: (i, 0, 0)),
        compiler_params=pltpu.CompilerParams(
            dimension_semantics=("parallel",),
            vmem_limit_bytes=vmem_limit,
        ),
        cost_estimate=cost,
    )(labels2, student_logits, teacher_logits)

    ce_loss = jnp.sum(partial[:, 0, 0]) / jnp.float32(B)
    kl = jnp.sum(partial[:, 0, 1]) / jnp.float32(B)
    distill_loss = kl * jnp.float32(temperature) * jnp.float32(temperature)
    return jnp.float32(alpha) * distill_loss + jnp.float32(1.0 - alpha) * ce_loss


if __name__ == "__main__":
    key = jax.random.PRNGKey(0)
    k1, k2, k3, k4, k5 = jax.random.split(key, 5)

    B, C, H = 8, 32, 16
    student_logits = jax.random.normal(k1, (B, C), dtype=jnp.float32)
    teacher_logits = jax.random.normal(k2, (B, C), dtype=jnp.float32)
    labels = jax.random.randint(k3, (B,), 0, C, dtype=jnp.int32)
    # hidden states are accepted by forward() but never used in the PyTorch module
    student_hidden = jax.random.normal(k4, (B, H), dtype=jnp.float32)
    teacher_hidden = jax.random.normal(k5, (B, H), dtype=jnp.float32)

    alpha, temperature = 0.5, 2.0

    loss = combined_label_loss(labels, student_logits, teacher_logits,
                               student_hidden, teacher_hidden,
                               alpha=alpha, temperature=temperature)
    loss = jax.block_until_ready(loss)

    # reference check in plain JAX
    def ref(labels, s, t, n):
        lse = jax.nn.logsumexp(s, axis=-1)
        ce = jnp.mean(lse - s[jnp.arange(n), labels])
        tp = jax.nn.softmax(t / temperature, axis=-1)
        slp = jax.nn.log_softmax(s / temperature, axis=-1)
        tlp = jax.nn.log_softmax(t / temperature, axis=-1)
        kl = jnp.sum(tp * (tlp - slp)) / n * temperature ** 2
        return alpha * kl + (1 - alpha) * ce

    expected = ref(labels, student_logits, teacher_logits, B)
    assert jnp.allclose(loss, expected, rtol=1e-5, atol=1e-5), (loss, expected)

    # ragged-batch / in-kernel-masking check (B not a multiple of the sublane pack)
    B2, C2 = 6, 40
    s2 = jax.random.normal(k4, (B2, C2), dtype=jnp.float32)
    t2 = jax.random.normal(k5, (B2, C2), dtype=jnp.float32)
    l2 = jax.random.randint(k3, (B2,), 0, C2, dtype=jnp.int32)
    loss2 = jax.block_until_ready(
        combined_label_loss(l2, s2, t2, alpha=alpha, temperature=temperature))
    expected2 = ref(l2, s2, t2, B2)
    assert jnp.allclose(loss2, expected2, rtol=1e-5, atol=1e-5), (loss2, expected2)

    print("KERNEL_OK")
</pallas_src>

<mosaic_0001>
module attributes {stable_mosaic.version = 11 : i64} {
  func.func @_combined_loss_kernel(%arg0: i32, %arg1: memref<8x1xi32, #tpu.memory_space<vmem>>, %arg2: memref<8x32xf32, #tpu.memory_space<vmem>>, %arg3: memref<8x32xf32, #tpu.memory_space<vmem>>, %arg4: memref<1x8x128xf32, #tpu.memory_space<vmem>>) attributes {dimension_semantics = [#tpu.dimension_semantics<parallel>], iteration_bounds = array<i64: 1>, scalar_prefetch = 0 : i64, scratch_operands = 0 : i64, tpu.core_type = #tpu.core_type<tc>, window_params = [{transform_indices = @transform_0, window_bounds = array<i64: 8, 1>}, {transform_indices = @transform_1, window_bounds = array<i64: 8, 32>}, {transform_indices = @transform_2, window_bounds = array<i64: 8, 32>}, {transform_indices = @transform_3, window_bounds = array<i64: 1, 8, 128>}]} {
    %0 = tpu.iota {dimensions = array<i32: 0>} : vector<8x1xi32>
    %c8_i32 = arith.constant 8 : i32
    %1 = arith.muli %arg0, %c8_i32 : i32
    %2 = vector.broadcast %1 : i32 to vector<8x1xi32>
    %3 = arith.addi %0, %2 : vector<8x1xi32>
    %c8_i32_0 = arith.constant 8 : i32
    %4 = vector.broadcast %c8_i32_0 : i32 to vector<8x1xi32>
    %5 = arith.cmpi slt, %3, %4 : vector<8x1xi32>
    %6 = arith.extui %5 : vector<8x1xi1> to vector<8x1xi32>
    %7 = arith.sitofp %6 : vector<8x1xi32> to vector<8x1xf32>
    %c0 = arith.constant 0 : index
    %c0_1 = arith.constant 0 : index
    %8 = vector.load %arg2[%c0, %c0_1] : memref<8x32xf32, #tpu.memory_space<vmem>>, vector<8x32xf32>
    %cst = arith.constant -1.000000e+30 : f32
    %9 = vector.shape_cast %5 : vector<8x1xi1> to vector<8x1xi1>
    %10 = vector.broadcast %9 : vector<8x1xi1> to vector<8x32xi1>
    %11 = vector.broadcast %cst : f32 to vector<8x32xf32>
    %12 = arith.select %10, %8, %11 : vector<8x32xi1>, vector<8x32xf32>
    %c0_2 = arith.constant 0 : index
    %c0_3 = arith.constant 0 : index
    %13 = vector.load %arg3[%c0_2, %c0_3] : memref<8x32xf32, #tpu.memory_space<vmem>>, vector<8x32xf32>
    %cst_4 = arith.constant -1.000000e+30 : f32
    %14 = vector.shape_cast %5 : vector<8x1xi1> to vector<8x1xi1>
    %15 = vector.broadcast %14 : vector<8x1xi1> to vector<8x32xi1>
    %16 = vector.broadcast %cst_4 : f32 to vector<8x32xf32>
    %17 = arith.select %15, %13, %16 : vector<8x32xi1>, vector<8x32xf32>
    %c0_5 = arith.constant 0 : index
    %c0_6 = arith.constant 0 : index
    %18 = vector.load %arg1[%c0_5, %c0_6] : memref<8x1xi32, #tpu.memory_space<vmem>>, vector<8x1xi32>
    %cst_7 = arith.constant dense<0xFF800000> : vector<8xf32>
    %19 = vector.multi_reduction <maximumf>, %12, %cst_7 [1] : vector<8x32xf32> to vector<8xf32>
    %20 = vector.shape_cast %19 : vector<8xf32> to vector<8x1xf32>
    %21 = vector.broadcast %20 : vector<8x1xf32> to vector<8x32xf32>
    %22 = arith.subf %12, %21 : vector<8x32xf32>
    %23 = math.exp %22 : vector<8x32xf32>
    %cst_8 = arith.constant dense<0.000000e+00> : vector<8xf32>
    %24 = vector.multi_reduction <add>, %23, %cst_8 [1] : vector<8x32xf32> to vector<8xf32>
    %25 = vector.shape_cast %24 : vector<8xf32> to vector<8x1xf32>
    %26 = tpu.iota {dimensions = array<i32: 1>} : vector<8x32xi32>
    %27 = vector.broadcast %18 : vector<8x1xi32> to vector<8x32xi32>
    %28 = arith.cmpi eq, %26, %27 : vector<8x32xi32>
    %cst_9 = arith.constant 0.000000e+00 : f32
    %29 = vector.broadcast %cst_9 : f32 to vector<8x32xf32>
    %30 = arith.select %28, %12, %29 : vector<8x32xi1>, vector<8x32xf32>
    %cst_10 = arith.constant dense<0.000000e+00> : vector<8xf32>
    %31 = vector.multi_reduction <add>, %30, %cst_10 [1] : vector<8x32xf32> to vector<8xf32>
    %32 = vector.shape_cast %31 : vector<8xf32> to vector<8x1xf32>
    %33 = math.log %25 : vector<8x1xf32>
    %34 = arith.addf %20, %33 : vector<8x1xf32>
    %35 = arith.subf %34, %32 : vector<8x1xf32>
    %36 = arith.mulf %35, %7 : vector<8x1xf32>
    %cst_11 = arith.constant 5.000000e-01 : f32
    %37 = vector.broadcast %cst_11 : f32 to vector<8x32xf32>
    %38 = arith.mulf %37, %22 : vector<8x32xf32>
    %39 = math.exp %38 : vector<8x32xf32>
    %cst_12 = arith.constant dense<0.000000e+00> : vector<8xf32>
    %40 = vector.multi_reduction <add>, %39, %cst_12 [1] : vector<8x32xf32> to vector<8xf32>
    %41 = vector.shape_cast %40 : vector<8xf32> to vector<8x1xf32>
    %cst_13 = arith.constant 5.000000e-01 : f32
    %42 = vector.broadcast %cst_13 : f32 to vector<8x32xf32>
    %43 = arith.mulf %17, %42 : vector<8x32xf32>
    %cst_14 = arith.constant dense<0xFF800000> : vector<8xf32>
    %44 = vector.multi_reduction <maximumf>, %43, %cst_14 [1] : vector<8x32xf32> to vector<8xf32>
    %45 = vector.shape_cast %44 : vector<8xf32> to vector<8x1xf32>
    %46 = vector.broadcast %45 : vector<8x1xf32> to vector<8x32xf32>
    %47 = arith.subf %43, %46 : vector<8x32xf32>
    %48 = math.exp %47 : vector<8x32xf32>
    %cst_15 = arith.constant dense<0.000000e+00> : vector<8xf32>
    %49 = vector.multi_reduction <add>, %48, %cst_15 [1] : vector<8x32xf32> to vector<8xf32>
    %50 = vector.shape_cast %49 : vector<8xf32> to vector<8x1xf32>
    %51 = arith.subf %47, %38 : vector<8x32xf32>
    %52 = arith.mulf %48, %51 : vector<8x32xf32>
    %cst_16 = arith.constant dense<0.000000e+00> : vector<8xf32>
    %53 = vector.multi_reduction <add>, %52, %cst_16 [1] : vector<8x32xf32> to vector<8xf32>
    %54 = vector.shape_cast %53 : vector<8xf32> to vector<8x1xf32>
    %55 = arith.divf %54, %50 : vector<8x1xf32>
    %56 = math.log %41 : vector<8x1xf32>
    %57 = arith.addf %55, %56 : vector<8x1xf32>
    %58 = math.log %50 : vector<8x1xf32>
    %59 = arith.subf %57, %58 : vector<8x1xf32>
    %60 = arith.mulf %59, %7 : vector<8x1xf32>
    %61 = vector.shape_cast %36 : vector<8x1xf32> to vector<1x8x1xf32>
    %cst_17 = arith.constant dense<0.000000e+00> : vector<1xf32>
    %62 = vector.multi_reduction <add>, %61, %cst_17 [1, 2] : vector<1x8x1xf32> to vector<1xf32>
    %63 = vector.shape_cast %62 : vector<1xf32> to vector<1x1x1xf32>
    %64 = vector.extract %63[0, 0, 0] : f32 from vector<1x1x1xf32>
    %65 = vector.shape_cast %60 : vector<8x1xf32> to vector<1x8x1xf32>
    %cst_18 = arith.constant dense<0.000000e+00> : vector<1xf32>
    %66 = vector.multi_reduction <add>, %65, %cst_18 [1, 2] : vector<1x8x1xf32> to vector<1xf32>
    %67 = vector.shape_cast %66 : vector<1xf32> to vector<1x1x1xf32>
    %68 = vector.extract %67[0, 0, 0] : f32 from vector<1x1x1xf32>
    %69 = tpu.iota {dimensions = array<i32: 2>} : vector<1x8x128xi32>
    %70 = tpu.iota {dimensions = array<i32: 1>} : vector<1x8x128xi32>
    %c0_i32 = arith.constant 0 : i32
    %71 = vector.broadcast %c0_i32 : i32 to vector<1x8x128xi32>
    %72 = arith.cmpi eq, %70, %71 : vector<1x8x128xi32>
    %c0_i32_19 = arith.constant 0 : i32
    %73 = vector.broadcast %c0_i32_19 : i32 to vector<1x8x128xi32>
    %74 = arith.cmpi eq, %69, %73 : vector<1x8x128xi32>
    %75 = arith.andi %72, %74 : vector<1x8x128xi1>
    %c0_i32_20 = arith.constant 0 : i32
    %76 = vector.broadcast %c0_i32_20 : i32 to vector<1x8x128xi32>
    %77 = arith.cmpi eq, %70, %76 : vector<1x8x128xi32>
    %c1_i32 = arith.constant 1 : i32
    %78 = vector.broadcast %c1_i32 : i32 to vector<1x8x128xi32>
    %79 = arith.cmpi eq, %69, %78 : vector<1x8x128xi32>
    %80 = arith.andi %77, %79 : vector<1x8x128xi1>
    %cst_21 = arith.constant 0.000000e+00 : f32
    %81 = vector.broadcast %68 : f32 to vector<1x8x128xf32>
    %82 = vector.broadcast %cst_21 : f32 to vector<1x8x128xf32>
    %83 = arith.select %80, %81, %82 : vector<1x8x128xi1>, vector<1x8x128xf32>
    %84 = vector.broadcast %64 : f32 to vector<1x8x128xf32>
    %85 = arith.select %75, %84, %83 : vector<1x8x128xi1>, vector<1x8x128xf32>
    %c0_22 = arith.constant 0 : index
    %c0_23 = arith.constant 0 : index
    %c0_24 = arith.constant 0 : index
    %86 = vector.load %arg4[%c0_22, %c0_23, %c0_24] : memref<1x8x128xf32, #tpu.memory_space<vmem>>, vector<1x8x128xf32>
    tpu.vector_store %arg4[%c0_22, %c0_23, %c0_24], %85 {strides = array<i32>} : memref<1x8x128xf32, #tpu.memory_space<vmem>>, vector<1x8x128xf32>,
    return
  }
  func.func @transform_0(%arg0: i32) -> (i32, i32) {
    %c0_i32 = arith.constant 0 : i32
    %c0_i32_0 = arith.constant 0 : i32
    return %arg0, %c0_i32 : i32, i32
  }
  func.func @transform_1(%arg0: i32) -> (i32, i32) {
    %c0_i32 = arith.constant 0 : i32
    %c0_i32_0 = arith.constant 0 : i32
    return %arg0, %c0_i32 : i32, i32
  }
  func.func @transform_2(%arg0: i32) -> (i32, i32) {
    %c0_i32 = arith.constant 0 : i32
    %c0_i32_0 = arith.constant 0 : i32
    return %arg0, %c0_i32 : i32, i32
  }
  func.func @transform_3(%arg0: i32) -> (i32, i32, i32) {
    %c0_i32 = arith.constant 0 : i32
    %c0_i32_0 = arith.constant 0 : i32
    %c0_i32_1 = arith.constant 0 : i32
    return %arg0, %c0_i32, %c0_i32_0 : i32, i32, i32
  }
}

</mosaic_0001>

<bundles_post_ra>
// kernel: tpu_custom_call.1
= control target key start
LH: loop header
LB: loop body
LE: loop exit
PB: predicated region body
PF: predicated region fallthrough
CT: control target
= control target key end

     0   :  { %vm29_vm0 = vcmask 261120   ;;  %v175_v5 = vmov 0   ;;  %s230_s0 = inlined_call_operand.vmem [shape: s32[8,1], index: 0, kind: input, shape index: {}]   ;;  %s231_s1 = inlined_call_operand.vmem [shape: f32[8,32], index: 1, kind: input, shape index: {}]   ;;  %s232_s2 = inlined_call_operand.vmem [shape: f32[8,32], index: 2, kind: input, shape index: {}]   ;;  %s233_s3 = inlined_call_operand.hbm [shape: f32[1,8,128], index: 3, kind: output, shape index: {}]  }
   0x1   :  { %v23_v0 = vld [vmem:[%s231_s1] sm:$0xff]  ;;  %135 = vset.pattern.permute.xlu1 %v175_v5  ;;  %136 = vset.pattern.permute.xlu0 %v175_v5 }
   0x2   :  { %v26_v1 = vld [vmem:[%s232_s2] sm:$0xff]  ;;  %v30_v3 = vsel %vm29_vm0, %v23_v0, -inf }
   0x3   :  { %v28_v2 = vld [vmem:[%s230_s0] sm:$0xff]  ;;  %v60_v4 = vmul.f32 0.5, %v26_v1 }
   0x4   :  { %8 = vsyncpa [#allocation3], 0  ;;  %31 = vmax.xlane.f32.xlu0 %v30_v3  ;;  %42 = vperm.xlu1 %135, %v28_v2   ;;  %v15_v15 = vlaneseq  ;;  %vm84_vm2 = vcmask 7168   ;;  %s176_s1 = smov [#allocation2]  }
   0x5   :  { %v61_v6 = vsel %vm29_vm0, %v60_v4, -inf  ;;  %s121_s2 = sshll.u32 %s176_s1, 4  ;;  %s122_s2 = int_to_ptr.vmem [resolvable:$true] %s121_s2 }
   0x6   :  { %v210_v20 = vand.u32 127, %v15_v15  ;;  %v16_v62 = vshrl.u32 %v15_v15, 7  ;;  %s151_s19 = scalar_lea.vmem %s122_s2, 128  ;;  %p156_p1 = scmp.lt.s32.totalorder %s122_s2, %s122_s2 }
   0x7   :  { %p152_p0 = scmp.ne.s32.totalorder %s122_s2, %s151_s19  ;;  %p157_p2 = scmp.lt.s32.totalorder %s151_s19, %s151_s19 }
   0x8   :  { %62 = vmax.xlane.f32.xlu0 %v61_v6  ;;  %vm105_vm3 = vcmp.eq.s32.totalorder %v16_v62, 0  ;;  %vm108_vm4 = vcmp.eq.s32.totalorder %v210_v20, 1  ;;  %vm106_vm5 = vcmp.eq.s32.totalorder %v210_v20, 0 }
   0x9   :  { %vm109_vm6 = vmand %vm105_vm3, %vm108_vm4  ;;  %p158_p3 = por %p157_p2, %p156_p1 }
   0xa   :  { %vm107_vm7 = vmand %vm105_vm3, %vm106_vm5 }
   0xb   :  { %p159_p4 = pnand %p158_p3, %p152_p0 }
  0x83   :  { %v43_v22 = vpop.permute.xlu1 %42 }
  0x84   :  { %vm44_vm1 = vcmp.eq.s32.totalorder %v210_v20, %v43_v22 }
  0x85   :  { %v45_v26 = vsel %vm44_vm1, %v23_v0, 0.0 }
  0x86   :  { %v46_v28 = vsel %vm29_vm0, %v45_v26, 0.0 }
  0x91   :  { %v32_v7 = vpop.xlane.xlu0 %31 }
  0x92   :  { %v33_v8 = vsub.f32 %v23_v0, %v32_v7 }
  0x94   :  { %v34_v9 = vmul.f32 1.442695, %v33_v8  ;;  %v54_v10 = vmul.f32 0.5, %v33_v8 }
  0x95   :  { %v63_v11 = vpop.xlane.xlu0 %62 }
  0x96   :  { %137 = vpow2.f32 %v34_v9  ;;  %v55_v12 = vmul.f32 1.442695, %v54_v10  ;;  %v64_v13 = vsub.f32 %v60_v4, %v63_v11 }
  0x98   :  { %139 = vpow2.f32 %v55_v12  ;;  %v65_v14 = vmul.f32 1.442695, %v64_v13  ;;  %v70_v23 = vsub.f32 %v64_v13, %v54_v10 }
  0x9a   :  { %141 = vpow2.f32 %v65_v14 }
  0xa0   :  { %v138_v16 = vpop.eup %137 }
  0xa1   :  { %v36_v17 = vsel %vm29_vm0, %v138_v16, 0.0 }
  0xa2   :  { %v140_v18 = vpop.eup %139  ;;  %37 = vadd.xlane.f32.xlu1 %v36_v17 }
  0xa3   :  { %v57_v19 = vsel %vm29_vm0, %v140_v18, 0.0 }
  0xa4   :  { %v142_v21 = vpop.eup %141  ;;  %58 = vadd.xlane.f32.xlu0 %v57_v19 }
  0xa5   :  { %v67_v24 = vsel %vm29_vm0, %v142_v21, 0.0  ;;  %v71_v25 = vmul.f32 %v142_v21, %v70_v23 }
  0xa7   :  { %v72_v27 = vsel %vm29_vm0, %v71_v25, 0.0 }
  0xa8   :  { %68 = vadd.xlane.f32.xlu0 %v67_v24 }
  0xac   :  { %73 = vadd.xlane.f32.xlu0 %v72_v27 }
  0xb0   :  { %47 = vadd.xlane.f32.xlu0 %v46_v28 }
 0x12f   :  { %v38_v29 = vpop.xlane.xlu1 %37 }
 0x130   :  { %143 = vlog2.f32 %v38_v29 }
 0x131   :  { %v59_v30 = vpop.xlane.xlu0 %58 }
 0x132   :  { %145 = vlog2.f32 %v59_v30 }
 0x135   :  { %v69_v31 = vpop.xlane.xlu0 %68 }
 0x136   :  { %147 = vrcp.f32 %v69_v31 }
 0x137   :  { %149 = vlog2.f32 %v69_v31 }
 0x139   :  { %v74_v32 = vpop.xlane.xlu0 %73 }
 0x13a   :  { %v144_v33 = vpop.eup %143 }
 0x13b   :  { %v50_v34 = vmul.f32 0.6931472, %v144_v33 }
 0x13c   :  { %v146_v37 = vpop.eup %145 }
 0x13d   :  { %v51_v35 = vadd.f32 %v50_v34, %v32_v7  ;;  %v48_v36 = vpop.xlane.xlu0 %47  ;;  %v78_v41 = vmul.f32 0.6931472, %v146_v37 }
 0x13f   :  { %v52_v38 = vsub.f32 %v51_v35, %v48_v36 }
 0x140   :  { %v148_v39 = vpop.eup %147 }
 0x141   :  { %v150_v40 = vpop.eup %149  ;;  %v76_v42 = vmul.f32 %v148_v39, %v74_v32  ;;  %v85_v43 = vsel %vm84_vm2, %v52_v38, 0.0 }
 0x142   :  { %86 = vadd.xlane.f32.xlu0 %v85_v43  ;;  %v81_v45 = vmul.f32 0.6931472, %v150_v40 }
 0x143   :  { %v79_v44 = vadd.f32 %v78_v41, %v76_v42 }
 0x145   :  { %v82_v46 = vsub.f32 %v79_v44, %v81_v45 }
 0x147   :  { %v95_v47 = vsel %vm84_vm2, %v82_v46, 0.0 }
 0x148   :  { %96 = vadd.xlane.f32.xlu0 %v95_v47 }
 0x1cf   :  { %v87_v48 = vpop.xlane.xlu0 %86 }
 0x1d0   :  { %v88_v49 = vrot.slane %v87_v48, 4 }
 0x1d2   :  { %v89_v50 = vadd.f32 %v88_v49, %v87_v48 }
 0x1d4   :  { %v90_v51 = vrot.slane %v89_v50, 2 }
 0x1d5   :  { %v97_v52 = vpop.xlane.xlu0 %96 }
 0x1d6   :  { %v98_v53 = vrot.slane %v97_v52, 4  ;;  %v91_v54 = vadd.f32 %v90_v51, %v89_v50 }
 0x1d8   :  { %v99_v55 = vadd.f32 %v98_v53, %v97_v52  ;;  %v92_v56 = vrot.slane %v91_v54, 1 }
 0x1da   :  { %v100_v57 = vrot.slane %v99_v55, 2  ;;  %v93_v58 = vadd.f32 %v92_v56, %v91_v54 }
 0x1dc   :  { %v101_v59 = vadd.f32 %v100_v57, %v99_v55  ;;  %129 = vpush %v93_v58 }
 0x1de   :  { %v102_v60 = vrot.slane %v101_v59, 1 }
 0x1e0   :  { %v103_v61 = vadd.f32 %v102_v60, %v101_v59 }
 0x1e2   :  { %131 = vpush %v103_v61 }
 0x20d   :  { %s130_s0 = spop %129 }
 0x20e   :  { %v112_v0 = vstv %s130_s0 }
 0x213   :  { %s132_s18 = spop %131 }
 0x214   :  { %v110_v63 = vstv %s132_s18 }
 0x215   :  { %v111_v1 = vsel %vm109_vm6, %v110_v63, 0.0 }
 0x216   :  { %v113_v2 = vsel %vm107_vm7, %v112_v0, %v111_v1 }
 0x217   :  { %114 = vst [vmem:[#allocation2] sm:$0xff] %v113_v2 }
 0x218   :  { %162 = shalt.err (!%p159_p4)
}
 0x219   :  { %s163_s22 = scalar_lea.hbm %s233_s3, 128 }
 0x21a   :  { %p164_p5 = scmp.ne.s32.totalorder %s233_s3, %s163_s22  ;;  %p167_p6 = scmp.lt.u32.totalorder %s163_s22, %s233_s3 }
 0x21c   :  { %p169_p7 = pnand %p167_p6, %p164_p5 }
 0x21e   :  { %172 = shalt.err (!%p169_p7)
}
 0x21f   :  { %124 = dma.vmem_to_hbm [thread:$0]  %s122_s2, 128, %s233_s3, [#allocation3]  }
 0x220   :  { %173 = dma.done.wait [#allocation3], 128  }
 0x221   :  { %174 = vsyncadd [#allocation3], 4294967168 }
 0x222   :  { %128 = vsyncpa [#allocation3], 1 }

</bundles_post_ra>
